<compile_context>
chip_gen: v7x
topology: tpu7x:2x2x1
jax: 0.10.0
libtpu: 0.0.40
codegen_flags: <defaults>
</compile_context>

<pallas_src>
import math

import jax
import jax.numpy as jnp
from jax import lax
from jax.experimental import pallas as pl
from jax.experimental.pallas import tpu as pltpu


def _rnn_recurrence_kernel(ih_ref, whh_ref, o_ref):
    """Serial recurrence only: h_i = tanh(h_{i-1} @ W_hh[i]^T + ih[i]).

    ih_ref  : (num_blk, H)     f32  -- precomputed x @ W_ih^T + b_ih + b_hh
    whh_ref : (num_blk, H, H)  bf16 -- recurrent weights, original (out, in) layout
    o_ref   : (num_blk, H)     f32  -- one hidden-state row per block
    """
    num_blk, H = ih_ref.shape
    h = jnp.zeros((1, H), jnp.float32)
    # num_blk is small & static -> full static unroll (single invocation, no
    # per-step grid/pipeline overhead).
    for i in range(num_blk):
        # h @ W_hh[i]^T without materializing a transpose: contract dim 1 of
        # both operands. bf16 MXU inputs, f32 accumulation.
        hw = lax.dot_general(
            h.astype(jnp.bfloat16), whh_ref[i],
            dimension_numbers=(((1,), (1,)), ((), ())),
            preferred_element_type=jnp.float32)            # (1, H) f32
        h = jnp.tanh(hw + ih_ref[pl.ds(i, 1), :])          # f32 carry
        o_ref[pl.ds(i, 1), :] = h                          # lane-dense row store


def custom_rnn_forward(x, w_ih, w_hh, b_ih, b_hh, *, cir_length, sym_blk, num_blk):
    """x: (num_blk, D_in). Per-block weights: w_ih (num_blk, H, D_in),
    w_hh (num_blk, H, H), biases (num_blk, H)."""
    H = sym_blk * cir_length * 2

    # Hoisted non-recurrent term: one batched contraction (handled by XLA,
    # parallel-friendly, no weight transpose materialized). Only the serial
    # h @ W_hh chain goes through the Pallas kernel.
    ih = (jnp.einsum('bi,bhi->bh',
                     x.astype(jnp.float32), w_ih.astype(jnp.float32))
          + b_ih.astype(jnp.float32) + b_hh.astype(jnp.float32))      # (num_blk, H)

    whh_bf16 = w_hh.astype(jnp.bfloat16)                               # (num_blk, H, H)

    out = pl.pallas_call(
        _rnn_recurrence_kernel,
        out_shape=jax.ShapeDtypeStruct((num_blk, H), jnp.float32),
        grid_spec=pltpu.PrefetchScalarGridSpec(
            num_scalar_prefetch=0,
            grid=(1,),  # single invocation: whole recurrence in one kernel body
            in_specs=[
                pl.BlockSpec((num_blk, H), lambda i: (0, 0)),
                pl.BlockSpec((num_blk, H, H), lambda i: (0, 0, 0)),
            ],
            out_specs=pl.BlockSpec((num_blk, H), lambda i: (0, 0)),
        ),
        compiler_params=pltpu.CompilerParams(dimension_semantics=("arbitrary",)),
    )(ih, whh_bf16)

    # tmp.reshape((sym_blk, cir_length*2)) + row-block concatenation from the
    # PyTorch code, done once in the wrapper (free, lane-layout friendly).
    return out.reshape(num_blk * sym_blk, 2 * cir_length)


def reference_forward_f32(x, w_ih, w_hh, b_ih, b_hh, *, cir_length, sym_blk, num_blk):
    """Pure-JAX f32 mirror of the PyTorch CustomRNN.forward loop."""
    H = sym_blk * cir_length * 2
    h = jnp.zeros((H,), jnp.float32)
    rows = []
    for i in range(num_blk):
        h = jnp.tanh(w_ih[i] @ x[i] + w_hh[i] @ h + b_ih[i] + b_hh[i])
        rows.append(h.reshape(sym_blk, 2 * cir_length))
    return jnp.concatenate(rows, axis=0)


def reference_forward_bf16_matmul(x, w_ih, w_hh, b_ih, b_hh, *,
                                  cir_length, sym_blk, num_blk):
    """Reference with the same bf16 rounding on the recurrent matmul inputs
    (isolates layout/indexing bugs from expected quantization error)."""
    H = sym_blk * cir_length * 2
    ih = jnp.einsum('bi,bhi->bh', x, w_ih) + b_ih + b_hh
    h = jnp.zeros((1, H), jnp.float32)
    rows = []
    for i in range(num_blk):
        hw = jnp.dot(h.astype(jnp.bfloat16), w_hh[i].astype(jnp.bfloat16).T,
                     preferred_element_type=jnp.float32)
        h = jnp.tanh(hw + ih[i][None, :])
        rows.append(h.reshape(sym_blk, 2 * cir_length))
    return jnp.concatenate(rows, axis=0)


if __name__ == "__main__":
    cir_length, sym_blk, num_blk = 8, 4, 4
    H = sym_blk * cir_length * 2          # 64
    D_in = H                              # assumed RNNModule input size

    key = jax.random.PRNGKey(0)
    kx, kwi, kwh, kbi, kbh = jax.random.split(key, 5)
    bound = 1.0 / math.sqrt(H)            # PyTorch RNNCell-style init range

    x = jax.random.normal(kx, (num_blk, D_in), jnp.float32)
    w_ih = jax.random.uniform(kwi, (num_blk, H, D_in), jnp.float32, -bound, bound)
    w_hh = jax.random.uniform(kwh, (num_blk, H, H), jnp.float32, -bound, bound)
    b_ih = jax.random.uniform(kbi, (num_blk, H), jnp.float32, -bound, bound)
    b_hh = jax.random.uniform(kbh, (num_blk, H), jnp.float32, -bound, bound)

    out = custom_rnn_forward(x, w_ih, w_hh, b_ih, b_hh,
                             cir_length=cir_length, sym_blk=sym_blk,
                             num_blk=num_blk)
    out = jax.block_until_ready(out)
    assert out.shape == (sym_blk * num_blk, cir_length * 2)

    # Tight check vs. a reference using the same bf16-input / f32-accumulate
    # matmul (should agree to ~float rounding).
    ref_bf16 = reference_forward_bf16_matmul(
        x, w_ih, w_hh, b_ih, b_hh,
        cir_length=cir_length, sym_blk=sym_blk, num_blk=num_blk)
    assert jnp.allclose(out, ref_bf16, atol=1e-3, rtol=1e-3)

    # Looser check vs. the exact f32 PyTorch-semantics reference (difference
    # is just bf16 quantization of the recurrent matmul inputs).
    ref_f32 = reference_forward_f32(
        x, w_ih, w_hh, b_ih, b_hh,
        cir_length=cir_length, sym_blk=sym_blk, num_blk=num_blk)
    assert jnp.allclose(out, ref_f32, atol=5e-2, rtol=5e-2)

    print("KERNEL_OK")
</pallas_src>

<mosaic_0001>
module attributes {stable_mosaic.version = 11 : i64} {
  func.func @_rnn_recurrence_kernel(%arg0: i32, %arg1: memref<4x64xf32, #tpu.memory_space<vmem>>, %arg2: memref<4x64x64xbf16, #tpu.memory_space<vmem>>, %arg3: memref<4x64xf32, #tpu.memory_space<vmem>>) attributes {dimension_semantics = [#tpu.dimension_semantics<arbitrary>], iteration_bounds = array<i64: 1>, scalar_prefetch = 0 : i64, scratch_operands = 0 : i64, tpu.core_type = #tpu.core_type<tc>, window_params = [{pipeline_mode = #tpu.pipeline_mode<synchronous>, transform_indices = @transform_0, window_bounds = array<i64: 4, 64>}, {pipeline_mode = #tpu.pipeline_mode<synchronous>, transform_indices = @transform_1, window_bounds = array<i64: 4, 64, 64>}, {pipeline_mode = #tpu.pipeline_mode<synchronous>, transform_indices = @transform_2, window_bounds = array<i64: 4, 64>}]} {
    %cst = arith.constant 0.000000e+00 : f32
    %0 = vector.broadcast %cst : f32 to vector<1x64xf32>
    %1 = arith.truncf %0 : vector<1x64xf32> to vector<1x64xbf16>
    %c0 = arith.constant 0 : index
    %c0_0 = arith.constant 0 : index
    %c0_1 = arith.constant 0 : index
    %2 = vector.load %arg2[%c0, %c0_0, %c0_1] : memref<4x64x64xbf16, #tpu.memory_space<vmem>>, vector<1x64x64xbf16>
    %3 = vector.shape_cast %2 : vector<1x64x64xbf16> to vector<64x64xbf16>
    %cst_2 = arith.constant dense<0.000000e+00> : vector<1x64xf32>
    %4 = tpu.matmul %1, %3, %cst_2 {dimension_numbers = #tpu.dot_dimension_numbers<[1], [1], [0], [0], [0, 0, 1, 0], [], []>} : vector<1x64xbf16>, vector<64x64xbf16>, vector<1x64xf32> -> vector<1x64xf32>
    %c0_3 = arith.constant 0 : index
    %c0_4 = arith.constant 0 : index
    %5 = vector.load %arg1[%c0_3, %c0_4] : memref<4x64xf32, #tpu.memory_space<vmem>>, vector<1x64xf32>
    %6 = arith.addf %4, %5 : vector<1x64xf32>
    %7 = math.tanh %6 : vector<1x64xf32>
    %c0_5 = arith.constant 0 : index
    %c0_6 = arith.constant 0 : index
    %8 = vector.load %arg3[%c0_5, %c0_6] : memref<4x64xf32, #tpu.memory_space<vmem>>, vector<1x64xf32>
    tpu.vector_store %arg3[%c0_5, %c0_6], %7 {strides = array<i32>} : memref<4x64xf32, #tpu.memory_space<vmem>>, vector<1x64xf32>,
    %9 = arith.truncf %7 : vector<1x64xf32> to vector<1x64xbf16>
    %c1 = arith.constant 1 : index
    %c0_7 = arith.constant 0 : index
    %c0_8 = arith.constant 0 : index
    %10 = vector.load %arg2[%c1, %c0_7, %c0_8] : memref<4x64x64xbf16, #tpu.memory_space<vmem>>, vector<1x64x64xbf16>
    %11 = vector.shape_cast %10 : vector<1x64x64xbf16> to vector<64x64xbf16>
    %cst_9 = arith.constant dense<0.000000e+00> : vector<1x64xf32>
    %12 = tpu.matmul %9, %11, %cst_9 {dimension_numbers = #tpu.dot_dimension_numbers<[1], [1], [0], [0], [0, 0, 1, 0], [], []>} : vector<1x64xbf16>, vector<64x64xbf16>, vector<1x64xf32> -> vector<1x64xf32>
    %c1_10 = arith.constant 1 : index
    %c0_11 = arith.constant 0 : index
    %13 = vector.load %arg1[%c1_10, %c0_11] : memref<4x64xf32, #tpu.memory_space<vmem>>, vector<1x64xf32>
    %14 = arith.addf %12, %13 : vector<1x64xf32>
    %15 = math.tanh %14 : vector<1x64xf32>
    %c1_12 = arith.constant 1 : index
    %c0_13 = arith.constant 0 : index
    %16 = vector.load %arg3[%c1_12, %c0_13] : memref<4x64xf32, #tpu.memory_space<vmem>>, vector<1x64xf32>
    tpu.vector_store %arg3[%c1_12, %c0_13], %15 {strides = array<i32>} : memref<4x64xf32, #tpu.memory_space<vmem>>, vector<1x64xf32>,
    %17 = arith.truncf %15 : vector<1x64xf32> to vector<1x64xbf16>
    %c2 = arith.constant 2 : index
    %c0_14 = arith.constant 0 : index
    %c0_15 = arith.constant 0 : index
    %18 = vector.load %arg2[%c2, %c0_14, %c0_15] : memref<4x64x64xbf16, #tpu.memory_space<vmem>>, vector<1x64x64xbf16>
    %19 = vector.shape_cast %18 : vector<1x64x64xbf16> to vector<64x64xbf16>
    %cst_16 = arith.constant dense<0.000000e+00> : vector<1x64xf32>
    %20 = tpu.matmul %17, %19, %cst_16 {dimension_numbers = #tpu.dot_dimension_numbers<[1], [1], [0], [0], [0, 0, 1, 0], [], []>} : vector<1x64xbf16>, vector<64x64xbf16>, vector<1x64xf32> -> vector<1x64xf32>
    %c2_17 = arith.constant 2 : index
    %c0_18 = arith.constant 0 : index
    %21 = vector.load %arg1[%c2_17, %c0_18] : memref<4x64xf32, #tpu.memory_space<vmem>>, vector<1x64xf32>
    %22 = arith.addf %20, %21 : vector<1x64xf32>
    %23 = math.tanh %22 : vector<1x64xf32>
    %c2_19 = arith.constant 2 : index
    %c0_20 = arith.constant 0 : index
    %24 = vector.load %arg3[%c2_19, %c0_20] : memref<4x64xf32, #tpu.memory_space<vmem>>, vector<1x64xf32>
    tpu.vector_store %arg3[%c2_19, %c0_20], %23 {strides = array<i32>} : memref<4x64xf32, #tpu.memory_space<vmem>>, vector<1x64xf32>,
    %25 = arith.truncf %23 : vector<1x64xf32> to vector<1x64xbf16>
    %c3 = arith.constant 3 : index
    %c0_21 = arith.constant 0 : index
    %c0_22 = arith.constant 0 : index
    %26 = vector.load %arg2[%c3, %c0_21, %c0_22] : memref<4x64x64xbf16, #tpu.memory_space<vmem>>, vector<1x64x64xbf16>
    %27 = vector.shape_cast %26 : vector<1x64x64xbf16> to vector<64x64xbf16>
    %cst_23 = arith.constant dense<0.000000e+00> : vector<1x64xf32>
    %28 = tpu.matmul %25, %27, %cst_23 {dimension_numbers = #tpu.dot_dimension_numbers<[1], [1], [0], [0], [0, 0, 1, 0], [], []>} : vector<1x64xbf16>, vector<64x64xbf16>, vector<1x64xf32> -> vector<1x64xf32>
    %c3_24 = arith.constant 3 : index
    %c0_25 = arith.constant 0 : index
    %29 = vector.load %arg1[%c3_24, %c0_25] : memref<4x64xf32, #tpu.memory_space<vmem>>, vector<1x64xf32>
    %30 = arith.addf %28, %29 : vector<1x64xf32>
    %31 = math.tanh %30 : vector<1x64xf32>
    %c3_26 = arith.constant 3 : index
    %c0_27 = arith.constant 0 : index
    %32 = vector.load %arg3[%c3_26, %c0_27] : memref<4x64xf32, #tpu.memory_space<vmem>>, vector<1x64xf32>
    tpu.vector_store %arg3[%c3_26, %c0_27], %31 {strides = array<i32>} : memref<4x64xf32, #tpu.memory_space<vmem>>, vector<1x64xf32>,
    return
  }
  func.func @transform_0(%arg0: i32) -> (i32, i32) {
    %c0_i32 = arith.constant 0 : i32
    %c0_i32_0 = arith.constant 0 : i32
    %c0_i32_1 = arith.constant 0 : i32
    return %c0_i32, %c0_i32_0 : i32, i32
  }
  func.func @transform_1(%arg0: i32) -> (i32, i32, i32) {
    %c0_i32 = arith.constant 0 : i32
    %c0_i32_0 = arith.constant 0 : i32
    %c0_i32_1 = arith.constant 0 : i32
    %c0_i32_2 = arith.constant 0 : i32
    return %c0_i32, %c0_i32_0, %c0_i32_1 : i32, i32, i32
  }
  func.func @transform_2(%arg0: i32) -> (i32, i32) {
    %c0_i32 = arith.constant 0 : i32
    %c0_i32_0 = arith.constant 0 : i32
    %c0_i32_1 = arith.constant 0 : i32
    return %c0_i32, %c0_i32_0 : i32, i32
  }
}

</mosaic_0001>

<bundles_post_ra>
// kernel: tpu_custom_call.1
= control target key start
LH: loop header
LB: loop body
LE: loop exit
PB: predicated region body
PF: predicated region fallthrough
CT: control target
= control target key end

     0   :  { %7 = vsyncpa [#allocation3], 0  ;;  %s711_s0 = inlined_call_operand.hbm [shape: f32[4,64], index: 0, kind: input, shape index: {}]   ;;  %s712_s1 = inlined_call_operand.hbm [shape: bf16[4,64,64], index: 1, kind: input, shape index: {}]   ;;  %s713_s2 = inlined_call_operand.hbm [shape: f32[4,64], index: 2, kind: output, shape index: {}]  }
   0x1   :  { %8 = vsyncpa [#allocation6], 0 }
   0x2   :  { %9 = vsyncpa [#allocation4], 0  ;;  %s598_s9 = smov [#allocation2]   ;;  %s599_s11 = smov [#allocation5]  }
   0x3   :  { %s16_s10 = sshll.u32 %s598_s9, 4  ;;  %s25_s12 = sshll.u32 %s599_s11, 4  ;;  %s17_s10 = int_to_ptr.vmem [resolvable:$true] %s16_s10  ;;  %s621_s12 = int_to_ptr.vmem [resolvable:$true] %s25_s12 }
   0x4   :  { %s526_s15 = scalar_lea.hbm %s711_s0, 64 }
   0x5   :  { %p527_p0 = scmp.ne.s32.totalorder %s711_s0, %s526_s15  ;;  %p530_p1 = scmp.lt.u32.totalorder %s526_s15, %s711_s0 }
   0x7   :  { %p532_p2 = pnand %p530_p1, %p527_p0 }
   0x9   :  { %535 = shalt.err (!%p532_p2)
}
   0xa   :  { %s536_s20 = scalar_lea.vmem %s17_s10, 64  ;;  %p541_p4 = scmp.lt.s32.totalorder %s17_s10, %s17_s10 }
   0xb   :  { %p537_p3 = scmp.ne.s32.totalorder %s17_s10, %s536_s20  ;;  %p542_p5 = scmp.lt.s32.totalorder %s536_s20, %s536_s20 }
   0xd   :  { %p543_p6 = por %p542_p5, %p541_p4 }
   0xf   :  { %p544_p7 = pnand %p543_p6, %p537_p3 }
  0x11   :  { %547 = shalt.err (!%p544_p7)
}
  0x12   :  { %19 = dma.hbm_to_vmem [thread:$0]  %s711_s0, 64, %s17_s10, [#allocation3]  }
  0x13   :  { %s548_s25 = scalar_lea.hbm %s712_s1, 2048 }
  0x14   :  { %p549_p8 = scmp.ne.s32.totalorder %s712_s1, %s548_s25  ;;  %p552_p9 = scmp.lt.u32.totalorder %s548_s25, %s712_s1 }
  0x16   :  { %p554_p10 = pnand %p552_p9, %p549_p8 }
  0x18   :  { %557 = shalt.err (!%p554_p10)
}
  0x19   :  { %s558_s30 = scalar_lea.vmem %s621_s12, 2048  ;;  %p563_p12 = scmp.lt.s32.totalorder %s621_s12, %s621_s12 }
  0x1a   :  { %p559_p11 = scmp.ne.s32.totalorder %s621_s12, %s558_s30  ;;  %p564_p13 = scmp.lt.s32.totalorder %s558_s30, %s558_s30 }
  0x1c   :  { %p565_p0 = por %p564_p13, %p563_p12 }
  0x1e   :  { %p566_p1 = pnand %p565_p0, %p559_p11 }
  0x20   :  { %569 = shalt.err (!%p566_p1)
}
  0x21   :  { %s600_s0 = smov 64   ;;  %s601_s3 = smov 4  }
  0x22   :  { %31 = dma.hbm_to_vmem [thread:$0]  %s712_s1, 2048, %s621_s12, [#allocation6], %s600_s0, %s600_s0, %s601_s3  }
  0x23   :  { %592 = dma.done.wait [#allocation3], 64  }
  0x24   :  { %593 = vsyncadd [#allocation3], 4294967232 }
  0x25   :  { %594 = dma.done.wait [#allocation6], 2048  }
  0x26   :  { %595 = vsyncadd [#allocation6], 4294965248  ;;  %v602_v0 = vmov 0.0   ;;  %vm603_vm0 = vmmov 0   ;;  %vm68_vm1 = vcmask 523264   ;;  %v502_v1 = vld [vmem:[#allocation5] sm:$0xff]  }
  0x27   :  { %446 = vmatprep.subr.bf16.mxu0 %v602_v0  ;;  %454 = vmatprep.mubr.msk.bf16.mxu0 %vm603_vm0, %v602_v0  ;;  %v73_v2 = vsel %vm68_vm1, %v502_v1, 0  ;;  %v503_v3 = vld [vmem:[#allocation5 + $0x8] sm:$0xff]   ;;  %v506_v4 = vld [vmem:[#allocation5 + $0x20] sm:$0xff]   ;;  %v504_v9 = vld [vmem:[#allocation5 + $0x10] sm:$0xff]   ;;  %v604_v13 = vmov 0   ;;  %vm125_vm2 = vcmask 516096  }
  0x28   :  { %458 = vmatprep.subr.bf16.mxu1 %v602_v0  ;;  %466 = vmatprep.mubr.msk.bf16.mxu1 %vm603_vm0, %v602_v0  ;;  %v507_v5 = vld [vmem:[#allocation5 + $0x28] sm:$0xff]   ;;  %v162_v6 = vsel %vm68_vm1, %v506_v4, 0  ;;  %v76_v7 = vsel %vm68_vm1, %v503_v3, 0  ;;  %v79_v10 = vsel %vm68_vm1, %v504_v9, 0  ;;  %v505_v11 = vld [vmem:[#allocation5 + $0x18] sm:$0xff]   ;;  %v508_v14 = vld [vmem:[#allocation5 + $0x30] sm:$0xff]  }
  0x29   :  { %447 = vmatpush3.bf16.xpose.msra.mxu0 %v73_v2  ;;  %459 = vmatpush3.bf16.xpose.msra.mxu1 %v162_v6  ;;  %v165_v8 = vsel %vm68_vm1, %v507_v5, 0  ;;  %v82_v12 = vsel %vm68_vm1, %v505_v11, 0  ;;  %v168_v15 = vsel %vm68_vm1, %v508_v14, 0  ;;  %v509_v16 = vld [vmem:[#allocation5 + $0x38] sm:$0xff]   ;;  %v510_v18 = vld [vmem:[#allocation5 + $0x40] sm:$0xff]   ;;  %v511_v20 = vld [vmem:[#allocation5 + $0x48] sm:$0xff]  }
  0x2a   :  { %448 = vmatprep.subr.bf16.mxu0 %v602_v0  ;;  %460 = vmatprep.subr.bf16.mxu1 %v602_v0  ;;  %v171_v17 = vsel %vm68_vm1, %v509_v16, 0  ;;  %v250_v19 = vsel %vm68_vm1, %v510_v18, 0  ;;  %v253_v21 = vsel %vm68_vm1, %v511_v20, 0  ;;  %v47_v22 = vld [vmem:[#allocation2] sm:$0x1]  ;;  %v512_v30 = vld [vmem:[#allocation5 + $0x50] sm:$0xff]  }
  0x2b   :  { %v256_v31 = vsel %vm68_vm1, %v512_v30, 0  ;;  %v513_v32 = vld [vmem:[#allocation5 + $0x58] sm:$0xff]   ;;  %v514_v34 = vld [vmem:[#allocation5 + $0x60] sm:$0xff]   ;;  %v515_v36 = vld [vmem:[#allocation5 + $0x68] sm:$0xff]   ;;  %s605_s1 = smov [#allocation7]  }
  0x2c   :  { %v259_v33 = vsel %vm68_vm1, %v513_v32, 0  ;;  %v338_v35 = vsel %vm68_vm1, %v514_v34, 0  ;;  %v341_v37 = vsel %vm68_vm1, %v515_v36, 0  ;;  %v137_v38 = vld [vmem:[#allocation2 + $0x1] sm:$0x1]  ;;  %v516_v46 = vld [vmem:[#allocation5 + $0x70] sm:$0xff]  }
  0x2d   :  { %v344_v47 = vsel %vm68_vm1, %v516_v46, 0  ;;  %v517_v48 = vld [vmem:[#allocation5 + $0x78] sm:$0xff]   ;;  %s397_s6 = sshll.u32 %s605_s1, 4  ;;  %s398_s6 = int_to_ptr.vmem [resolvable:$true] %s397_s6 }
  0x2e   :  { %v347_v49 = vsel %vm68_vm1, %v517_v48, 0  ;;  %v225_v50 = vld [vmem:[#allocation2 + $0x2] sm:$0x1]  ;;  %v313_v58 = vld [vmem:[#allocation2 + $0x3] sm:$0x1]  ;;  %s570_s7 = scalar_lea.vmem %s398_s6, 64  ;;  %p575_p3 = scmp.lt.s32.totalorder %s398_s6, %s398_s6 }
  0x2f   :  { %p571_p2 = scmp.ne.s32.totalorder %s398_s6, %s570_s7  ;;  %p576_p4 = scmp.lt.s32.totalorder %s570_s7, %s570_s7 }
  0x31   :  { %449 = vmatpush3.bf16.xpose.msra.mxu0 %v76_v7  ;;  %461 = vmatpush3.bf16.xpose.msra.mxu1 %v165_v8  ;;  %p577_p5 = por %p576_p4, %p575_p3 }
  0x32   :  { %450 = vmatprep.subr.bf16.mxu0 %v602_v0  ;;  %462 = vmatprep.subr.bf16.mxu1 %v602_v0 }
  0x33   :  { %p578_p6 = pnand %p577_p5, %p571_p2 }
  0x39   :  { %451 = vmatpush3.bf16.xpose.msra.mxu0 %v79_v10  ;;  %463 = vmatpush3.bf16.xpose.msra.mxu1 %v168_v15 }
  0x3a   :  { %452 = vmatprep.subr.bf16.mxu0 %v602_v0  ;;  %464 = vmatprep.subr.bf16.mxu1 %v602_v0 }
  0x41   :  { %453 = vmatpush3.bf16.xpose.msra.mxu0 %v82_v12  ;;  %465 = vmatpush3.bf16.xpose.msra.mxu1 %v171_v17 }
  0x42   :  { %470 = vmatprep.subr.bf16.mxu0 %v602_v0  ;;  %482 = vmatprep.subr.bf16.mxu1 %v602_v0 }
  0x48   :  { %455 = vmatmul.mubr.bf16.vlgmr.msra.gmra.mrb[0].mxu0 %v604_v13 }
  0x49   :  { %478 = vmatprep.mubr.msk.bf16.mxu0 %vm603_vm0, %v602_v0  ;;  %471 = vmatpush3.bf16.xpose.msra.mxu0 %v250_v19 }
  0x4a   :  { %472 = vmatprep.subr.bf16.mxu0 %v602_v0 }
  0x51   :  { %473 = vmatpush3.bf16.xpose.msra.mxu0 %v253_v21 }
  0x52   :  { %474 = vmatprep.subr.bf16.mxu0 %v602_v0 }
  0x59   :  { %475 = vmatpush3.bf16.xpose.msra.mxu0 %v256_v31 }
  0x5a   :  { %476 = vmatprep.subr.bf16.mxu0 %v602_v0 }
  0x61   :  { %477 = vmatpush3.bf16.xpose.msra.mxu0 %v259_v33 }
 0x11b   :  { %v118_v23 = vpop.f32.mrb[0].mxu0 }
 0x11c   :  { %v119_v24 = vadd.f32 %v118_v23, %v47_v22  ;;  %v456_v25 = vpop.f32.mrb[1].mxu0 }
 0x11d   :  { %v121_v26 = vpop.f32.mrb[2].mxu0 }
 0x11e   :  { %518 = vtanh.f32 %v119_v24  ;;  %v457_v27 = vpop.f32.mrb[3].mxu0 }
 0x128   :  { %v519_v28 = vpop.eup %518 }
 0x129   :  { %v127_v29 = vpack.c.bf16 %v519_v28, %v519_v28  ;;  %126 = vst.msk [vmem:[#allocation7] sm:$0x1] %vm125_vm2, %v519_v28 }
 0x12b   :  { %467 = vmatmul.mubr.msk.bf16.vlgmr.msra.gmra.mrb[0].mxu1 %vm68_vm1, %v127_v29 }
 0x12c   :  { %490 = vmatprep.mubr.msk.bf16.mxu1 %vm603_vm0, %v602_v0  ;;  %483 = vmatpush3.bf16.xpose.msra.mxu1 %v338_v35 }
 0x12d   :  { %484 = vmatprep.subr.bf16.mxu1 %v602_v0 }
 0x134   :  { %485 = vmatpush3.bf16.xpose.msra.mxu1 %v341_v37 }
 0x135   :  { %486 = vmatprep.subr.bf16.mxu1 %v602_v0 }
 0x13c   :  { %487 = vmatpush3.bf16.xpose.msra.mxu1 %v344_v47 }
 0x13d   :  { %488 = vmatprep.subr.bf16.mxu1 %v602_v0 }
 0x144   :  { %489 = vmatpush3.bf16.xpose.msra.mxu1 %v347_v49 }
 0x1fe   :  { %v207_v39 = vpop.f32.mrb[0].mxu1 }
 0x1ff   :  { %v208_v40 = vadd.f32 %v207_v39, %v137_v38  ;;  %v468_v41 = vpop.f32.mrb[1].mxu1 }
 0x200   :  { %v210_v42 = vpop.f32.mrb[2].mxu1 }
 0x201   :  { %520 = vtanh.f32 %v208_v40  ;;  %v469_v43 = vpop.f32.mrb[3].mxu1 }
 0x20b   :  { %v521_v44 = vpop.eup %520 }
 0x20c   :  { %v215_v45 = vpack.c.bf16 %v521_v44, %v521_v44  ;;  %214 = vst.msk [vmem:[#allocation7 + $0x1] sm:$0x1] %vm125_vm2, %v521_v44 }
 0x20e   :  { %479 = vmatmul.mubr.msk.bf16.vlgmr.msra.gmra.mrb[4].mxu0 %vm68_vm1, %v215_v45 }
 0x2e1   :  { %v295_v51 = vpop.f32.mrb[4].mxu0 }
 0x2e2   :  { %v296_v52 = vadd.f32 %v295_v51, %v225_v50  ;;  %v480_v53 = vpop.f32.mrb[5].mxu0 }
 0x2e3   :  { %v298_v54 = vpop.f32.mrb[6].mxu0 }
 0x2e4   :  { %522 = vtanh.f32 %v296_v52  ;;  %v481_v55 = vpop.f32.mrb[7].mxu0 }
 0x2ee   :  { %v523_v56 = vpop.eup %522 }
 0x2ef   :  { %v303_v57 = vpack.c.bf16 %v523_v56, %v523_v56  ;;  %302 = vst.msk [vmem:[#allocation7 + $0x2] sm:$0x1] %vm125_vm2, %v523_v56 }
 0x2f1   :  { %491 = vmatmul.mubr.msk.bf16.vlgmr.msra.gmra.mrb[4].mxu1 %vm68_vm1, %v303_v57 }
 0x3c4   :  { %v383_v59 = vpop.f32.mrb[4].mxu1 }
 0x3c5   :  { %v384_v60 = vadd.f32 %v383_v59, %v313_v58  ;;  %v492_v61 = vpop.f32.mrb[5].mxu1 }
 0x3c6   :  { %v386_v62 = vpop.f32.mrb[6].mxu1 }
 0x3c7   :  { %524 = vtanh.f32 %v384_v60  ;;  %v493_v63 = vpop.f32.mrb[7].mxu1 }
 0x3d1   :  { %v525_v0 = vpop.eup %524 }
 0x3d2   :  { %390 = vst.msk [vmem:[#allocation7 + $0x3] sm:$0x1] %vm125_vm2, %v525_v0 }
 0x3d3   :  { %581 = shalt.err (!%p578_p6)
}
 0x3d4   :  { %s582_s10 = scalar_lea.hbm %s713_s2, 64 }
 0x3d5   :  { %p583_p7 = scmp.ne.s32.totalorder %s713_s2, %s582_s10  ;;  %p586_p8 = scmp.lt.u32.totalorder %s582_s10, %s713_s2 }
 0x3d7   :  { %p588_p9 = pnand %p586_p8, %p583_p7 }
 0x3d9   :  { %591 = shalt.err (!%p588_p9)
}
 0x3da   :  { %400 = dma.vmem_to_hbm [thread:$0]  %s398_s6, 64, %s713_s2, [#allocation4]  }
 0x3db   :  { %596 = dma.done.wait [#allocation4], 64  }
 0x3dc   :  { %597 = vsyncadd [#allocation4], 4294967232 }
 0x3dd   :  { %404 = vsyncpa [#allocation3], 1 }
 0x3de   :  { %405 = vsyncpa [#allocation6], 1 }
 0x3df   :  { %406 = vsyncpa [#allocation4], 1 }

</bundles_post_ra>
